<compile_context>
chip_gen: v7x
topology: tpu7x:2x2x1
jax: 0.10.0
libtpu: 0.0.40
codegen_flags: <defaults>
</compile_context>

<pallas_src>
import functools

import jax
import jax.numpy as jnp
from jax.experimental import pallas as pl
from jax.experimental.pallas import tpu as pltpu

_LANE = 128   # lane width (last dim alignment for lane-dense N dims)
_SUB_BF16 = 16  # bf16 sublane packing (second-to-last dim alignment)


def _round_up(x: int, m: int) -> int:
    return (x + m - 1) // m * m


def _ann_kernel(x_ref, w1_ref, b1_ref, w2_ref, b2_ref, o_ref):
    # x tile: (tb, n_in) bf16 (pre-cast in wrapper); weights bf16; biases f32.
    h = jnp.dot(x_ref[...], w1_ref[...], preferred_element_type=jnp.float32)
    h = h + b1_ref[...]                       # f32 bias add (v5e-safe, no bf16 VPU)
    h = jnp.maximum(h, 0.0)                   # f32 ReLU
    # dropout(p=0.0) == identity -> elided
    out = jnp.dot(h.astype(jnp.bfloat16), w2_ref[...],
                  preferred_element_type=jnp.float32)
    out = out + b2_ref[...]                   # f32 bias add
    o_ref[...] = out.astype(o_ref.dtype)


def prepare_params(w1, b1, w2, b2):
    """Pad params once to lane-dense shapes; cast weights to bf16 (MXU-native).

    w1: (n_input, n_hidden)  b1: (1, n_hidden)
    w2: (n_hidden, n_output) b2: (1, n_output)
    Only the *output* (N) dims of each matmul are padded to 128 for lane-dense
    stores; the contraction dim of the first matmul (n_input) is left as-is.
    """
    n_in, n_hid = w1.shape
    n_out = w2.shape[1]
    n_hid_p = _round_up(n_hid, _LANE)
    n_out_p = _round_up(n_out, _LANE)

    w1p = jnp.pad(w1, ((0, 0), (0, n_hid_p - n_hid))).astype(jnp.bfloat16)
    b1p = jnp.pad(b1, ((0, 0), (0, n_hid_p - n_hid))).astype(jnp.float32)
    w2p = jnp.pad(w2, ((0, n_hid_p - n_hid), (0, n_out_p - n_out))).astype(jnp.bfloat16)
    b2p = jnp.pad(b2, ((0, 0), (0, n_out_p - n_out))).astype(jnp.float32)
    return w1p, b1p, w2p, b2p


def _choose_batch_tile(B, n_in, n_hid_p, n_out_p, batch_tile):
    """Pick tb: minimal over-padding, >=2 grid steps when worthwhile (v7x megacore),
    and small enough that per-step tiles + f32 hidden scratch fit a VMEM budget."""
    num_steps = max(-(-B // batch_tile), 2 if B >= 32 else 1)
    tb = _round_up(-(-B // num_steps), _SUB_BF16)

    # Resident (single-buffered) weights + biases.
    weight_bytes = n_in * n_hid_p * 2 + n_hid_p * n_out_p * 2 + (n_hid_p + n_out_p) * 4
    budget = 40 * 1024 * 1024 - weight_bytes  # leave headroom under v7x's 64 MiB

    def tile_bytes(t):
        # 2x double-buffered x (bf16) + 2x double-buffered out (f32) + f32 hidden.
        return 2 * (t * n_in * 2) + 2 * (t * n_out_p * 4) + t * n_hid_p * 4

    while tb > _SUB_BF16 and tile_bytes(tb) > budget:
        tb = _round_up(tb // 2, _SUB_BF16)
    return tb, weight_bytes, tile_bytes(tb)


@functools.partial(jax.jit, static_argnames=("n_output", "batch_tile"))
def ann_forward(x, w1p, b1p, w2p, b2p, *, n_output, batch_tile=512):
    """Fused MLP forward: relu(x @ W1 + b1) @ W2 + b2, with pre-padded params.

    x: (B, n_input) f32. Params come from prepare_params. Returns (B, n_output) f32.
    """
    B, n_in = x.shape
    n_hid_p = w1p.shape[1]
    n_out_p = w2p.shape[1]

    tb, weight_bytes, step_bytes = _choose_batch_tile(B, n_in, n_hid_p, n_out_p, batch_tile)
    b_p = _round_up(B, tb)          # padding is < tb (few sublanes), not a whole max tile
    grid = (b_p // tb,)

    # Pad batch rows only (zero rows -> sliced off) and fuse the bf16 cast here,
    # so the kernel-side x DMA is half-width and there is no K-dim pad of x.
    xp = jnp.pad(x, ((0, b_p - B), (0, 0))).astype(jnp.bfloat16)

    flops = 2 * b_p * (n_in * n_hid_p + n_hid_p * n_out_p)
    bytes_accessed = (xp.size * 2 + w1p.size * 2 + w2p.size * 2
                      + b1p.size * 4 + b2p.size * 4 + b_p * n_out_p * 4)

    # Budgeted VMEM limit: never claim the full 64 MiB of a v7x TC.
    vmem_limit = min(48 * 1024 * 1024,
                     max(32 * 1024 * 1024, 2 * (weight_bytes + step_bytes)))

    resident = dict(pipeline_mode=pl.Buffered(1))  # constant index_map -> 1 buffer

    out_p = pl.pallas_call(
        _ann_kernel,
        out_shape=jax.ShapeDtypeStruct((b_p, n_out_p), jnp.float32),
        grid=grid,
        in_specs=[
            pl.BlockSpec((tb, n_in), lambda i: (i, 0)),                      # x: batch-tiled, K unpadded
            pl.BlockSpec((n_in, n_hid_p), lambda i: (0, 0), **resident),     # W1: VMEM-resident
            pl.BlockSpec((1, n_hid_p), lambda i: (0, 0), **resident),        # b1
            pl.BlockSpec((n_hid_p, n_out_p), lambda i: (0, 0), **resident),  # W2
            pl.BlockSpec((1, n_out_p), lambda i: (0, 0), **resident),        # b2
        ],
        out_specs=pl.BlockSpec((tb, n_out_p), lambda i: (i, 0)),             # lane-dense output
        compiler_params=pltpu.CompilerParams(
            dimension_semantics=("parallel",),   # shard batch across TCs (v7x)
            vmem_limit_bytes=vmem_limit,
        ),
        cost_estimate=pl.CostEstimate(
            flops=flops, transcendentals=0, bytes_accessed=bytes_accessed),
    )(xp, w1p, b1p, w2p, b2p)

    return out_p[:B, :n_output]


def init_params(key, n_input, n_hidden, n_output):
    """Deterministic init mimicking PyTorch nn.Linear (uniform(-1/sqrt(fan_in), +)).

    Weights stored transposed vs PyTorch, as (in, out), so the kernel does x @ W + b.
    """
    k1, k2, k3, k4 = jax.random.split(key, 4)
    lim1 = 1.0 / jnp.sqrt(jnp.float32(n_input))
    lim2 = 1.0 / jnp.sqrt(jnp.float32(n_hidden))
    w1 = jax.random.uniform(k1, (n_input, n_hidden), jnp.float32, -lim1, lim1)
    b1 = jax.random.uniform(k2, (1, n_hidden), jnp.float32, -lim1, lim1)
    w2 = jax.random.uniform(k3, (n_hidden, n_output), jnp.float32, -lim2, lim2)
    b2 = jax.random.uniform(k4, (1, n_output), jnp.float32, -lim2, lim2)
    return w1, b1, w2, b2


if __name__ == "__main__":
    # Small shapes consistent with the module's forward (plain MLP on vectors).
    batch, n_input, n_hidden, n_output = 8, 16, 32, 4

    key = jax.random.PRNGKey(0)
    kx, kp = jax.random.split(key)
    x = jax.random.normal(kx, (batch, n_input), jnp.float32)
    w1, b1, w2, b2 = init_params(kp, n_input, n_hidden, n_output)

    # Pad / cast params once (not per call).
    w1p, b1p, w2p, b2p = prepare_params(w1, b1, w2, b2)

    out = ann_forward(x, w1p, b1p, w2p, b2p, n_output=n_output)
    out = jax.block_until_ready(out)

    # Reference in plain JAX f32 (dropout p=0.0 is identity). bf16 MXU operands
    # change numerics slightly vs f32, so the tolerance is loosened accordingly.
    ref = jnp.maximum(x @ w1 + b1, 0.0) @ w2 + b2
    assert out.shape == (batch, n_output)
    assert jnp.allclose(out, ref, atol=2e-2, rtol=2e-2)

    print("KERNEL_OK")
</pallas_src>

<mosaic_0001>
module attributes {stable_mosaic.version = 11 : i64} {
  func.func @_ann_kernel(%arg0: i32, %arg1: memref<16x16xbf16, #tpu.memory_space<vmem>>, %arg2: memref<16x128xbf16, #tpu.memory_space<vmem>>, %arg3: memref<1x128xf32, #tpu.memory_space<vmem>>, %arg4: memref<128x128xbf16, #tpu.memory_space<vmem>>, %arg5: memref<1x128xf32, #tpu.memory_space<vmem>>, %arg6: memref<16x128xf32, #tpu.memory_space<vmem>>) attributes {dimension_semantics = [#tpu.dimension_semantics<parallel>], iteration_bounds = array<i64: 1>, scalar_prefetch = 0 : i64, scratch_operands = 0 : i64, tpu.core_type = #tpu.core_type<tc>, window_params = [{transform_indices = @transform_0, window_bounds = array<i64: 16, 16>}, {pipeline_mode = #tpu.pipeline_mode<synchronous>, transform_indices = @transform_1, window_bounds = array<i64: 16, 128>}, {pipeline_mode = #tpu.pipeline_mode<synchronous>, transform_indices = @transform_2, window_bounds = array<i64: 1, 128>}, {pipeline_mode = #tpu.pipeline_mode<synchronous>, transform_indices = @transform_3, window_bounds = array<i64: 128, 128>}, {pipeline_mode = #tpu.pipeline_mode<synchronous>, transform_indices = @transform_4, window_bounds = array<i64: 1, 128>}, {transform_indices = @transform_5, window_bounds = array<i64: 16, 128>}]} {
    %c0 = arith.constant 0 : index
    %c0_0 = arith.constant 0 : index
    %0 = vector.load %arg1[%c0, %c0_0] : memref<16x16xbf16, #tpu.memory_space<vmem>>, vector<16x16xbf16>
    %c0_1 = arith.constant 0 : index
    %c0_2 = arith.constant 0 : index
    %1 = vector.load %arg2[%c0_1, %c0_2] : memref<16x128xbf16, #tpu.memory_space<vmem>>, vector<16x128xbf16>
    %cst = arith.constant dense<0.000000e+00> : vector<16x128xf32>
    %2 = tpu.matmul %0, %1, %cst {dimension_numbers = #tpu.dot_dimension_numbers<[1], [0], [0], [1], [0, 0, 1, 1], [], []>} : vector<16x16xbf16>, vector<16x128xbf16>, vector<16x128xf32> -> vector<16x128xf32>
    %c0_3 = arith.constant 0 : index
    %c0_4 = arith.constant 0 : index
    %3 = vector.load %arg3[%c0_3, %c0_4] : memref<1x128xf32, #tpu.memory_space<vmem>>, vector<1x128xf32>
    %4 = vector.broadcast %3 : vector<1x128xf32> to vector<16x128xf32>
    %5 = arith.addf %2, %4 : vector<16x128xf32>
    %cst_5 = arith.constant 0.000000e+00 : f32
    %6 = vector.broadcast %cst_5 : f32 to vector<16x128xf32>
    %7 = arith.maximumf %5, %6 : vector<16x128xf32>
    %8 = arith.truncf %7 : vector<16x128xf32> to vector<16x128xbf16>
    %c0_6 = arith.constant 0 : index
    %c0_7 = arith.constant 0 : index
    %9 = vector.load %arg4[%c0_6, %c0_7] : memref<128x128xbf16, #tpu.memory_space<vmem>>, vector<128x128xbf16>
    %cst_8 = arith.constant dense<0.000000e+00> : vector<16x128xf32>
    %10 = tpu.matmul %8, %9, %cst_8 {dimension_numbers = #tpu.dot_dimension_numbers<[1], [0], [0], [1], [0, 0, 1, 1], [], []>} : vector<16x128xbf16>, vector<128x128xbf16>, vector<16x128xf32> -> vector<16x128xf32>
    %c0_9 = arith.constant 0 : index
    %c0_10 = arith.constant 0 : index
    %11 = vector.load %arg5[%c0_9, %c0_10] : memref<1x128xf32, #tpu.memory_space<vmem>>, vector<1x128xf32>
    %12 = vector.broadcast %11 : vector<1x128xf32> to vector<16x128xf32>
    %13 = arith.addf %10, %12 : vector<16x128xf32>
    %c0_11 = arith.constant 0 : index
    %c0_12 = arith.constant 0 : index
    %14 = vector.load %arg6[%c0_11, %c0_12] : memref<16x128xf32, #tpu.memory_space<vmem>>, vector<16x128xf32>
    tpu.vector_store %arg6[%c0_11, %c0_12], %13 {strides = array<i32>} : memref<16x128xf32, #tpu.memory_space<vmem>>, vector<16x128xf32>,
    return
  }
  func.func @transform_0(%arg0: i32) -> (i32, i32) {
    %c0_i32 = arith.constant 0 : i32
    %c0_i32_0 = arith.constant 0 : i32
    return %arg0, %c0_i32 : i32, i32
  }
  func.func @transform_1(%arg0: i32) -> (i32, i32) {
    %c0_i32 = arith.constant 0 : i32
    %c0_i32_0 = arith.constant 0 : i32
    %c0_i32_1 = arith.constant 0 : i32
    return %c0_i32, %c0_i32_0 : i32, i32
  }
  func.func @transform_2(%arg0: i32) -> (i32, i32) {
    %c0_i32 = arith.constant 0 : i32
    %c0_i32_0 = arith.constant 0 : i32
    %c0_i32_1 = arith.constant 0 : i32
    return %c0_i32, %c0_i32_0 : i32, i32
  }
  func.func @transform_3(%arg0: i32) -> (i32, i32) {
    %c0_i32 = arith.constant 0 : i32
    %c0_i32_0 = arith.constant 0 : i32
    %c0_i32_1 = arith.constant 0 : i32
    return %c0_i32, %c0_i32_0 : i32, i32
  }
  func.func @transform_4(%arg0: i32) -> (i32, i32) {
    %c0_i32 = arith.constant 0 : i32
    %c0_i32_0 = arith.constant 0 : i32
    %c0_i32_1 = arith.constant 0 : i32
    return %c0_i32, %c0_i32_0 : i32, i32
  }
  func.func @transform_5(%arg0: i32) -> (i32, i32) {
    %c0_i32 = arith.constant 0 : i32
    %c0_i32_0 = arith.constant 0 : i32
    return %arg0, %c0_i32 : i32, i32
  }
}

</mosaic_0001>

<bundles_post_ra>
// kernel: ann_forward.1
= control target key start
LH: loop header
LB: loop body
LE: loop exit
PB: predicated region body
PF: predicated region fallthrough
CT: control target
= control target key end

     0   :  { %10 = vsyncpa [#allocation3], 0  ;;  %s313_s18 = smov [#allocation2]   ;;  %s378_s0 = inlined_call_operand.vmem [shape: bf16[16,16], index: 0, kind: input, shape index: {}]   ;;  %s379_s1 = inlined_call_operand.vmem [shape: bf16[16,128], index: 1, kind: input, shape index: {}]   ;;  %s380_s2 = inlined_call_operand.vmem [shape: f32[1,128], index: 2, kind: input, shape index: {}]   ;;  %s381_s3 = inlined_call_operand.hbm [shape: bf16[128,128], index: 3, kind: input, shape index: {}]   ;;  %s382_s4 = inlined_call_operand.vmem [shape: f32[1,128], index: 4, kind: input, shape index: {}]   ;;  %s383_s5 = inlined_call_operand.vmem [shape: f32[16,128], index: 5, kind: output, shape index: {}]  }
   0x1   :  { %s22_s19 = sshll.u32 %s313_s18, 4  ;;  %s289_s22 = scalar_lea.hbm %s381_s3, 1024  ;;  %s23_s19 = int_to_ptr.vmem [resolvable:$true] %s22_s19 }
   0x2   :  { %p290_p0 = scmp.ne.s32.totalorder %s381_s3, %s289_s22  ;;  %p293_p1 = scmp.lt.u32.totalorder %s289_s22, %s381_s3 }
   0x4   :  { %p295_p2 = pnand %p293_p1, %p290_p0 }
   0x6   :  { %298 = shalt.err (!%p295_p2)
}
   0x7   :  { %s299_s27 = scalar_lea.vmem %s23_s19, 1024  ;;  %p304_p4 = scmp.lt.s32.totalorder %s23_s19, %s23_s19 }
   0x8   :  { %p300_p3 = scmp.ne.s32.totalorder %s23_s19, %s299_s27  ;;  %p305_p5 = scmp.lt.s32.totalorder %s299_s27, %s299_s27 }
   0xa   :  { %p306_p6 = por %p305_p5, %p304_p4 }
   0xc   :  { %p307_p7 = pnand %p306_p6, %p300_p3 }
   0xe   :  { %310 = shalt.err (!%p307_p7)
}
   0xf   :  { %s314_s28 = smov 64   ;;  %s315_s29 = smov 4  }
  0x10   :  { %28 = dma.hbm_to_vmem [thread:$0]  %s381_s3, 1024, %s23_s19, [#allocation3], %s314_s28, %s314_s28, %s315_s29  }
  0x11   :  { %311 = dma.done.wait [#allocation3], 1024  }
  0x12   :  { %312 = vsyncadd [#allocation3], 4294966272  ;;  %v316_v0 = vmov 0.0   ;;  %vm317_vm0 = vmmov 0   ;;  %v279_v1 = vld [vmem:[%s379_s1] sm:$0xff]   ;;  %vm57_vm1 = vcmask 130048  }
  0x13   :  { %248 = vmatprep.subr.bf16.mxu0 %v316_v0  ;;  %250 = vmatprep.mubr.msk.bf16.mxu0 %vm317_vm0, %v316_v0  ;;  %v280_v2 = vld [vmem:[%s378_s0] sm:$0xff]   ;;  %v282_v4 = vld [vmem:[#allocation2 + $0x8] sm:$0xff]   ;;  %v283_v5 = vld [vmem:[#allocation2 + $0x10] sm:$0xff]  }
  0x14   :  { %254 = vmatprep.subr.bf16.mxu1 %v316_v0  ;;  %270 = vmatprep.mubr.msk.bf16.mxu1 %vm317_vm0, %v316_v0  ;;  %v281_v3 = vld [vmem:[#allocation2] sm:$0xff]   ;;  %v284_v6 = vld [vmem:[#allocation2 + $0x18] sm:$0xff]   ;;  %v286_v8 = vld [vmem:[#allocation2 + $0x28] sm:$0xff]  }
  0x15   :  { %249 = vmatpush3.bf16.msra.mxu0 %v279_v1  ;;  %255 = vmatpush3.bf16.msra.mxu1 %v281_v3  ;;  %v285_v7 = vld [vmem:[#allocation2 + $0x20] sm:$0xff]   ;;  %v287_v9 = vld [vmem:[#allocation2 + $0x30] sm:$0xff]   ;;  %v288_v10 = vld [vmem:[#allocation2 + $0x38] sm:$0xff]  }
  0x16   :  { %256 = vmatprep.subr.bf16.mxu1 %v316_v0  ;;  %v224_v11 = vld [vmem:[%s380_s2] ss:$0 sm:$0xff] }
  0x17   :  { %v228_v21 = vld [vmem:[%s382_s4] ss:$0 sm:$0xff] }
  0x18   :  { %251 = vmatmul.mubr.msk.bf16.vlgmr.msra.gmra.mrb[0].mxu0 %vm57_vm1, %v280_v2 }
  0x19   :  { %257 = vmatpush3.bf16.msra.mxu1 %v282_v4 }
  0x1a   :  { %258 = vmatprep.subr.bf16.mxu1 %v316_v0 }
  0x1d   :  { %259 = vmatpush3.bf16.msra.mxu1 %v283_v5 }
  0x1e   :  { %260 = vmatprep.subr.bf16.mxu1 %v316_v0 }
  0x21   :  { %261 = vmatpush3.bf16.msra.mxu1 %v284_v6 }
  0x22   :  { %262 = vmatprep.subr.bf16.mxu1 %v316_v0 }
  0x25   :  { %263 = vmatpush3.bf16.msra.mxu1 %v285_v7 }
  0x26   :  { %264 = vmatprep.subr.bf16.mxu1 %v316_v0 }
  0x29   :  { %265 = vmatpush3.bf16.msra.mxu1 %v286_v8 }
  0x2a   :  { %266 = vmatprep.subr.bf16.mxu1 %v316_v0 }
  0x2d   :  { %267 = vmatpush3.bf16.msra.mxu1 %v287_v9 }
  0x2e   :  { %268 = vmatprep.subr.bf16.mxu1 %v316_v0 }
  0x31   :  { %269 = vmatpush3.bf16.msra.mxu1 %v288_v10 }
  0xeb   :  { %v95_v12 = vpop.f32.mrb[0].mxu0 }
  0xec   :  { %v96_v13 = vadd.f32 %v224_v11, %v95_v12  ;;  %v252_v14 = vpop.f32.mrb[1].mxu0 }
  0xed   :  { %v98_v15 = vpop.f32.mrb[2].mxu0 }
  0xee   :  { %v99_v16 = vadd.f32 %v224_v11, %v98_v15  ;;  %v253_v17 = vpop.f32.mrb[3].mxu0  ;;  %v102_v18 = vmax.f32 %v96_v13, 0.0 }
  0xf0   :  { %v103_v19 = vmax.f32 %v99_v16, 0.0 }
  0xf2   :  { %v104_v20 = vpack.c.bf16 %v103_v19, %v102_v18 }
  0xf4   :  { %271 = vmatmul.mubr.bf16.vlgmr.msra.gmra.mrb[0].mxu1 %v104_v20 }
 0x1c7   :  { %v210_v22 = vpop.f32.mrb[0].mxu1 }
 0x1c8   :  { %v211_v23 = vadd.f32 %v228_v21, %v210_v22  ;;  %v272_v24 = vpop.f32.mrb[1].mxu1 }
 0x1c9   :  { %v213_v25 = vpop.f32.mrb[2].mxu1 }
 0x1ca   :  { %217 = vst [vmem:[%s383_s5] sm:$0xff] %v211_v23  ;;  %v214_v26 = vadd.f32 %v228_v21, %v213_v25  ;;  %v273_v27 = vpop.f32.mrb[3].mxu1 }
 0x1cc   :  { %218 = vst [vmem:[%s383_s5 + $0x8] sm:$0xff] %v214_v26 }
 0x1cd   :  { %223 = vsyncpa [#allocation3], 1 }

</bundles_post_ra>
